<compile_context>
chip_gen: v6e
topology: v6e:2x2x1
jax: 0.10.0
libtpu: 0.0.40
codegen_flags: <defaults>
</compile_context>

<pallas_src>
import functools
import math

import jax
import jax.numpy as jnp
from jax.experimental import pallas as pl
from jax.experimental.pallas import tpu as pltpu


# ----------------------------------------------------------------------------
# Pallas kernels
# ----------------------------------------------------------------------------

def _round_up(x, m):
    return (x + m - 1) // m * m


def _matmul_kernel(a_ref, b_ref, o_ref, *, scale, act):
    # Single K step (full-extent K block): MXU matmul in bf16, f32 accumulate,
    # then fused BN-scale + activation epilogue on the resident (TM, N) tile.
    acc = jnp.dot(a_ref[...], b_ref[...], preferred_element_type=jnp.float32)
    if scale != 1.0:
        acc = acc * scale
    if act == "relu6":
        acc = jnp.clip(acc, 0.0, 6.0)
    elif act == "leaky":
        acc = jnp.where(acc >= 0.0, acc, 0.01 * acc)
    elif act == "relu":
        acc = jnp.maximum(acc, 0.0)
    o_ref[...] = acc


@functools.partial(jax.jit, static_argnames=("scale", "act"))
def pallas_matmul(a, b, scale=1.0, act="none"):
    """(M,K) @ (K,N) -> (M,N) f32. bf16 MXU inputs, fused scale/act epilogue."""
    M, K = a.shape
    K2, N = b.shape
    assert K == K2
    TM = 256 if M >= 256 else _round_up(max(M, 1), 16)
    Mp = _round_up(M, TM)
    a_p = a.astype(jnp.bfloat16)
    if Mp != M:
        a_p = jnp.pad(a_p, ((0, Mp - M), (0, 0)))
    b_p = b.astype(jnp.bfloat16)

    kernel = functools.partial(_matmul_kernel, scale=float(scale), act=act)
    out = pl.pallas_call(
        kernel,
        out_shape=jax.ShapeDtypeStruct((Mp, N), jnp.float32),
        grid_spec=pltpu.PrefetchScalarGridSpec(
            num_scalar_prefetch=0,
            grid=(Mp // TM,),
            in_specs=[
                pl.BlockSpec((TM, K), lambda i: (i, 0)),   # A tile
                pl.BlockSpec((K, N), lambda i: (0, 0)),    # full B, loaded once
            ],
            out_specs=pl.BlockSpec((TM, N), lambda i: (i, 0)),
        ),
        compiler_params=pltpu.CompilerParams(
            dimension_semantics=("parallel",),
            vmem_limit_bytes=48 * 1024 * 1024),
    )(a_p, b_p)
    return out[:M]


def _pallas_ew(fn, *arrays):
    """Fused elementwise Pallas kernel over same-shape f32 arrays."""
    shape = arrays[0].shape
    flats = [jnp.ravel(a) for a in arrays]
    n = flats[0].shape[0]
    rows = -(-n // 128)
    br = 512 if rows >= 512 else _round_up(rows, 8)
    rows_p = _round_up(rows, br)
    npad = rows_p * 128
    mats = [jnp.pad(f, (0, npad - n)).reshape(rows_p, 128) for f in flats]

    def kernel(*refs):
        refs[-1][...] = fn(*[r[...] for r in refs[:-1]])

    out = pl.pallas_call(
        kernel,
        out_shape=jax.ShapeDtypeStruct((rows_p, 128), jnp.float32),
        grid_spec=pltpu.PrefetchScalarGridSpec(
            num_scalar_prefetch=0,
            grid=(rows_p // br,),
            in_specs=[pl.BlockSpec((br, 128), lambda i: (i, 0)) for _ in arrays],
            out_specs=pl.BlockSpec((br, 128), lambda i: (i, 0)),
        ),
        compiler_params=pltpu.CompilerParams(dimension_semantics=("parallel",)),
    )(*mats)
    return out.reshape(-1)[:n].reshape(shape)


@jax.jit
def pallas_maf_fuse(y, y_r, x_all):
    """MAF hot path: wei = sigmoid(x_all); y*wei + y_r*(1-wei)."""
    def f(y_, yr_, xa_):
        wei = jax.nn.sigmoid(xa_)
        return y_ * wei + yr_ * (1.0 - wei)
    return _pallas_ew(f, y, y_r, x_all)


def _att_gate_kernel(att_ref, cv_ref, o_ref):
    # att block (1,1,HW) broadcasts over the disparity axis of cv (1,D,HW).
    o_ref[...] = jax.nn.sigmoid(att_ref[...]) * cv_ref[...]


@jax.jit
def pallas_att_gate(att, cv):
    """FeatureAtt hot path: sigmoid(att)[:, :, None] * cv, no HBM broadcast."""
    B, C, D, H, W = cv.shape
    BC, HW = B * C, H * W
    cv2 = cv.reshape(BC, D, HW)
    att2 = att.reshape(BC, 1, HW)
    out = pl.pallas_call(
        _att_gate_kernel,
        out_shape=jax.ShapeDtypeStruct((BC, D, HW), jnp.float32),
        grid_spec=pltpu.PrefetchScalarGridSpec(
            num_scalar_prefetch=0,
            grid=(BC,),
            in_specs=[
                pl.BlockSpec((1, 1, HW), lambda i: (i, 0, 0)),
                pl.BlockSpec((1, D, HW), lambda i: (i, 0, 0)),
            ],
            out_specs=pl.BlockSpec((1, D, HW), lambda i: (i, 0, 0)),
        ),
        compiler_params=pltpu.CompilerParams(dimension_semantics=("parallel",)),
    )(att2, cv2)
    return out.reshape(B, C, D, H, W)


def _corr_kernel(l_ref, rp_ref, o_ref, *, D, W, inv_cg):
    # l_ref:  (1, Cg, H, W)        normalized left features of one batch*group
    # rp_ref: (1, Cg, H, W+D-1)    normalized right, left-padded with D-1 zeros
    # o_ref:  (D, 1, H, W)
    l = l_ref[0]                                   # (Cg, H, W)
    for d in range(D):                             # static unroll over disparity
        start = (D - 1) - d
        r_win = rp_ref[0, :, :, start:start + W]   # zeros cover invalid columns
        o_ref[d, 0] = jnp.sum(l * r_win, axis=0) * inv_cg


@functools.partial(jax.jit, static_argnames=("maxdisp", "num_groups"))
def pallas_corr_volume(left, right, *, maxdisp, num_groups):
    """Group-wise normalized correlation volume -> (B, G, D, H, W)."""
    B, C, H, W = left.shape
    Cg = C // num_groups
    BG = B * num_groups
    l = left.reshape(BG, Cg, H, W)
    r = right.reshape(BG, Cg, H, W)
    eps = 1e-5
    l = l / (jnp.sqrt(jnp.sum(l * l, axis=1, keepdims=True)) + eps)
    r = r / (jnp.sqrt(jnp.sum(r * r, axis=1, keepdims=True)) + eps)
    D = maxdisp
    rp = jnp.pad(r, ((0, 0), (0, 0), (0, 0), (D - 1, 0)))

    kernel = functools.partial(_corr_kernel, D=D, W=W, inv_cg=1.0 / Cg)
    out = pl.pallas_call(
        kernel,
        out_shape=jax.ShapeDtypeStruct((D, BG, H, W), jnp.float32),
        grid_spec=pltpu.PrefetchScalarGridSpec(
            num_scalar_prefetch=0,
            grid=(BG,),
            in_specs=[
                pl.BlockSpec((1, Cg, H, W), lambda g: (g, 0, 0, 0)),
                pl.BlockSpec((1, Cg, H, W + D - 1), lambda g: (g, 0, 0, 0)),
            ],
            out_specs=pl.BlockSpec((D, 1, H, W), lambda g: (0, g, 0, 0)),
        ),
        compiler_params=pltpu.CompilerParams(dimension_semantics=("parallel",)),
    )(l, rp)
    return out.reshape(D, B, num_groups, H, W).transpose(1, 2, 0, 3, 4)


# ----------------------------------------------------------------------------
# Conv / deconv wrappers (im2col + Pallas matmul with fused BN/act epilogue)
# ----------------------------------------------------------------------------

def _im2col_2d(x, kh, kw, stride, pad):
    B, C, H, W = x.shape
    xp = jnp.pad(x, ((0, 0), (0, 0), (pad, pad), (pad, pad)))
    OH = (H + 2 * pad - kh) // stride + 1
    OW = (W + 2 * pad - kw) // stride + 1
    cols = []
    for i in range(kh):
        for j in range(kw):
            cols.append(xp[:, :, i:i + stride * OH:stride, j:j + stride * OW:stride])
    col = jnp.stack(cols, axis=2).reshape(B, C * kh * kw, OH, OW)
    return col, OH, OW


def conv2d(x, w, stride=1, pad=0, bias=None, scale=1.0, act="none"):
    OC, IC, kh, kw = w.shape
    col, OH, OW = _im2col_2d(x, kh, kw, stride, pad)
    B = x.shape[0]
    a = col.transpose(0, 2, 3, 1).reshape(B * OH * OW, IC * kh * kw)
    out = pallas_matmul(a, w.reshape(OC, -1).T, scale=scale, act=act)
    out = out.reshape(B, OH, OW, OC).transpose(0, 3, 1, 2)
    if bias is not None:
        out = out + bias[None, :, None, None]
    return out


def deconv2d(x, w, stride=2, pad=1, bias=None, scale=1.0, act="none"):
    # w: (IC, OC, kh, kw)  (PyTorch ConvTranspose2d layout)
    IC, OC, kh, kw = w.shape
    B, C, H, W = x.shape
    xd = jnp.zeros((B, C, (H - 1) * stride + 1, (W - 1) * stride + 1), x.dtype)
    xd = xd.at[:, :, ::stride, ::stride].set(x)
    wt = jnp.flip(w, axis=(2, 3)).transpose(1, 0, 2, 3)
    return conv2d(xd, wt, stride=1, pad=kh - 1 - pad, bias=bias,
                  scale=scale, act=act)


def _im2col_3d(x, kd, kh, kw, stride, pad):
    B, C, D, H, W = x.shape
    xp = jnp.pad(x, ((0, 0), (0, 0), (pad, pad), (pad, pad), (pad, pad)))
    OD = (D + 2 * pad - kd) // stride + 1
    OH = (H + 2 * pad - kh) // stride + 1
    OW = (W + 2 * pad - kw) // stride + 1
    cols = []
    for a in range(kd):
        for i in range(kh):
            for j in range(kw):
                cols.append(xp[:, :, a:a + stride * OD:stride,
                               i:i + stride * OH:stride,
                               j:j + stride * OW:stride])
    col = jnp.stack(cols, axis=2).reshape(B, C * kd * kh * kw, OD, OH, OW)
    return col, OD, OH, OW


def conv3d(x, w, stride=1, pad=0, bias=None, scale=1.0, act="none"):
    OC, IC, kd, kh, kw = w.shape
    col, OD, OH, OW = _im2col_3d(x, kd, kh, kw, stride, pad)
    B = x.shape[0]
    a = col.transpose(0, 2, 3, 4, 1).reshape(B * OD * OH * OW, IC * kd * kh * kw)
    out = pallas_matmul(a, w.reshape(OC, -1).T, scale=scale, act=act)
    out = out.reshape(B, OD, OH, OW, OC).transpose(0, 4, 1, 2, 3)
    if bias is not None:
        out = out + bias[None, :, None, None, None]
    return out


def deconv3d(x, w, stride=2, pad=1, bias=None, scale=1.0, act="none"):
    # w: (IC, OC, kd, kh, kw)
    IC, OC, kd, kh, kw = w.shape
    B, C, D, H, W = x.shape
    xd = jnp.zeros((B, C, (D - 1) * stride + 1, (H - 1) * stride + 1,
                    (W - 1) * stride + 1), x.dtype)
    xd = xd.at[:, :, ::stride, ::stride, ::stride].set(x)
    wt = jnp.flip(w, axis=(2, 3, 4)).transpose(1, 0, 2, 3, 4)
    return conv3d(xd, wt, stride=1, pad=kd - 1 - pad, bias=bias,
                  scale=scale, act=act)


def depthwise_conv2d(x, w, stride=1, pad=1):
    # w: (C, 1, kh, kw)  -- plain JAX glue (see TODO at top)
    B, C, H, W = x.shape
    kh, kw = w.shape[2], w.shape[3]
    xp = jnp.pad(x, ((0, 0), (0, 0), (pad, pad), (pad, pad)))
    OH = (H + 2 * pad - kh) // stride + 1
    OW = (W + 2 * pad - kw) // stride + 1
    out = jnp.zeros((B, C, OH, OW), x.dtype)
    for i in range(kh):
        for j in range(kw):
            out = out + (xp[:, :, i:i + stride * OH:stride,
                            j:j + stride * OW:stride]
                         * w[:, 0, i, j][None, :, None, None])
    return out


# ----------------------------------------------------------------------------
# Small numeric helpers
# ----------------------------------------------------------------------------

_BN_SCALE = 1.0 / math.sqrt(1.0 + 1e-5)   # eval-mode BN w/ default running stats


def bn_eval(x):
    return x * _BN_SCALE


def relu6(x):
    return jnp.minimum(jnp.maximum(x, 0.0), 6.0)


def make_seq(*fns):
    def apply(x):
        for f in fns:
            x = f(x)
        return x
    return apply


# ----------------------------------------------------------------------------
# Deterministic parameter factory
# ----------------------------------------------------------------------------

class ParamGen:
    def __init__(self, seed=1):
        self.key = jax.random.PRNGKey(seed)

    def _next(self):
        self.key, sub = jax.random.split(self.key)
        return sub

    def conv2d_w(self, oc, ic, k):
        std = math.sqrt(2.0 / (k * k * oc))
        return std * jax.random.normal(self._next(), (oc, ic, k, k), jnp.float32)

    def conv3d_w(self, oc, ic, k):
        std = math.sqrt(2.0 / (k * k * k * oc))
        return std * jax.random.normal(self._next(), (oc, ic, k, k, k), jnp.float32)

    def deconv2d_w(self, ic, oc, k):
        std = math.sqrt(2.0 / (k * k * oc))
        return std * jax.random.normal(self._next(), (ic, oc, k, k), jnp.float32)

    def deconv3d_w(self, ic, oc, k):
        std = math.sqrt(2.0 / (k * k * k * oc))
        return std * jax.random.normal(self._next(), (ic, oc, k, k, k), jnp.float32)

    def bias(self, n):
        return 0.01 * jax.random.normal(self._next(), (n,), jnp.float32)


# ----------------------------------------------------------------------------
# Module builders (functional closures, matching the PyTorch module structure)
# ----------------------------------------------------------------------------

def make_conv2d_layer(pg, in_c, out_c, k, stride, pad, bias, scale=1.0, act="none"):
    w = pg.conv2d_w(out_c, in_c, k)
    b = pg.bias(out_c) if bias else None
    return lambda x: conv2d(x, w, stride, pad, bias=b, scale=scale, act=act)


def make_basic_conv2d(pg, in_c, out_c, k, stride, pad, bn=True, relu_act=True,
                      deconv=False):
    scale = _BN_SCALE if bn else 1.0
    act = "leaky" if relu_act else "none"
    if deconv:
        w = pg.deconv2d_w(in_c, out_c, k)
        return lambda x: deconv2d(x, w, stride, pad, scale=scale, act=act)
    w = pg.conv2d_w(out_c, in_c, k)
    return lambda x: conv2d(x, w, stride, pad, scale=scale, act=act)


def make_basic_conv3d(pg, in_c, out_c, k, stride, pad, bn=True, relu_act=True,
                      deconv=False):
    scale = _BN_SCALE if bn else 1.0
    act = "leaky" if relu_act else "none"
    if deconv:
        w = pg.deconv3d_w(in_c, out_c, k)
        return lambda x: deconv3d(x, w, stride, pad, scale=scale, act=act)
    w = pg.conv3d_w(out_c, in_c, k)
    return lambda x: conv3d(x, w, stride, pad, scale=scale, act=act)


def make_conv3d_bn_tail(pg, in_c, out_c):
    w = pg.conv3d_w(out_c, in_c, 3)
    return lambda x: conv3d(x, w, 1, 1, scale=_BN_SCALE, act="none")


def make_conv2x(pg, in_c, out_c, deconv=False, concat=True):
    k = 4 if deconv else 3
    conv1 = make_basic_conv2d(pg, in_c, out_c, k, 2, 1, deconv=deconv)
    c2 = out_c * 2 if concat else out_c
    conv2 = make_basic_conv2d(pg, c2, c2, 3, 1, 1)

    def apply(x, rem):
        x = conv1(x)
        if x.shape[-2:] != rem.shape[-2:]:
            x = jax.image.resize(x, x.shape[:2] + rem.shape[-2:], method="nearest")
        if concat:
            x = jnp.concatenate([x, rem], axis=1)
        else:
            x = x + rem
        return conv2(x)
    return apply


# ---- MobileNetV2 feature extractor (synthetic weights, timm topology) -------

def make_ds_block(pg, in_c, out_c):
    w_dw = pg.conv2d_w(in_c, 1, 3)
    w_pw = pg.conv2d_w(out_c, in_c, 1)

    def apply(x):
        h = relu6(bn_eval(depthwise_conv2d(x, w_dw, 1, 1)))
        return conv2d(h, w_pw, 1, 0, scale=_BN_SCALE, act="none")
    return apply


def make_ir_block(pg, in_c, out_c, stride, exp_ratio=6):
    mid = in_c * exp_ratio
    w_pw = pg.conv2d_w(mid, in_c, 1)
    w_dw = pg.conv2d_w(mid, 1, 3)
    w_pwl = pg.conv2d_w(out_c, mid, 1)
    has_res = (stride == 1 and in_c == out_c)

    def apply(x):
        shortcut = x
        h = conv2d(x, w_pw, 1, 0, scale=_BN_SCALE, act="relu6")
        h = relu6(bn_eval(depthwise_conv2d(h, w_dw, stride, 1)))
        h = conv2d(h, w_pwl, 1, 0, scale=_BN_SCALE, act="none")
        if has_res:
            h = h + shortcut
        return h
    return apply


def make_feature(pg):
    w_stem = pg.conv2d_w(32, 3, 3)
    b0 = [make_ds_block(pg, 32, 16)]
    b1 = [make_ir_block(pg, 16, 24, 2), make_ir_block(pg, 24, 24, 1)]
    b2 = [make_ir_block(pg, 24, 32, 2), make_ir_block(pg, 32, 32, 1),
          make_ir_block(pg, 32, 32, 1)]
    b3 = [make_ir_block(pg, 32, 64, 2), make_ir_block(pg, 64, 64, 1),
          make_ir_block(pg, 64, 64, 1), make_ir_block(pg, 64, 64, 1),
          make_ir_block(pg, 64, 96, 1), make_ir_block(pg, 96, 96, 1),
          make_ir_block(pg, 96, 96, 1)]
    b4 = [make_ir_block(pg, 96, 160, 2), make_ir_block(pg, 160, 160, 1),
          make_ir_block(pg, 160, 160, 1)]

    def apply(x):
        x = conv2d(x, w_stem, 2, 1, scale=_BN_SCALE, act="relu6")
        for blk in b0:
            x = blk(x)
        for blk in b1:
            x = blk(x)
        x4 = x
        for blk in b2:
            x = blk(x)
        x8 = x
        for blk in b3:
            x = blk(x)
        x16 = x
        for blk in b4:
            x = blk(x)
        x32 = x
        return [x4, x8, x16, x32]
    return apply


def make_featup(pg):
    deconv32_16 = make_conv2x(pg, 160, 96, deconv=True)
    deconv16_8 = make_conv2x(pg, 192, 32, deconv=True)
    deconv8_4 = make_conv2x(pg, 64, 24, deconv=True)
    conv4 = make_basic_conv2d(pg, 48, 48, 3, 1, 1)

    def apply(feat):
        x4, x8, x16, x32 = feat
        x16 = deconv32_16(x32, x16)
        x8 = deconv16_8(x16, x8)
        x4 = deconv8_4(x8, x4)
        x4 = conv4(x4)
        return [x4, x8, x16, x32]
    return apply


def make_feature_att(pg, cv_chan, feat_chan):
    seq = make_seq(
        make_basic_conv2d(pg, feat_chan, feat_chan // 2, 1, 1, 0),
        make_conv2d_layer(pg, feat_chan // 2, cv_chan, 1, 1, 0, bias=True))

    def apply(cv, feat):
        att = seq(feat)                      # (B, cv_chan, H, W)
        return pallas_att_gate(att, cv)      # broadcast over D inside kernel
    return apply


def make_maf(pg, cv_chan, im_chan):
    semantic = make_seq(
        make_basic_conv2d(pg, im_chan, im_chan // 2, 1, 1, 0),
        make_conv2d_layer(pg, im_chan // 2, cv_chan, 1, 1, 0, bias=True))
    pre1 = make_seq(make_basic_conv3d(pg, cv_chan, cv_chan, 3, 1, 1),
                    make_conv3d_bn_tail(pg, cv_chan, cv_chan))
    att_s = make_seq(make_basic_conv3d(pg, 2 * cv_chan, cv_chan, 3, 1, 1),
                     make_conv3d_bn_tail(pg, cv_chan, cv_chan))
    att_m = make_seq(make_basic_conv3d(pg, 2 * cv_chan, cv_chan, 3, 1, 1),
                     make_basic_conv3d(pg, cv_chan, 2 * cv_chan, 3, 1, 1),
                     make_basic_conv3d(pg, 2 * cv_chan, cv_chan, 3, 1, 1),
                     make_conv3d_bn_tail(pg, cv_chan, cv_chan))
    att_l = make_seq(make_basic_conv3d(pg, 2 * cv_chan, cv_chan, 3, 1, 1),
                     make_basic_conv3d(pg, cv_chan, 2 * cv_chan, 3, 1, 1),
                     make_basic_conv3d(pg, 2 * cv_chan, cv_chan, 3, 1, 1),
                     make_basic_conv3d(pg, cv_chan, 2 * cv_chan, 3, 1, 1),
                     make_basic_conv3d(pg, 2 * cv_chan, cv_chan, 3, 1, 1),
                     make_conv3d_bn_tail(pg, cv_chan, cv_chan))
    agg = make_seq(make_basic_conv3d(pg, cv_chan, cv_chan, 3, 1, 1),
                   make_conv3d_bn_tail(pg, cv_chan, cv_chan))

    def apply(x, residual):
        res = semantic(residual)[:, :, None, :, :]
        y = x * res
        y_r = pre1(y)
        xa = jnp.concatenate([y, y_r], axis=1)
        x_all = att_s(xa) + att_m(xa) + att_l(xa)
        xi = pallas_maf_fuse(y, y_r, x_all)
        return agg(xi)
    return apply


def make_hourglass_fusion(pg, in_ch):
    conv1 = make_seq(make_basic_conv3d(pg, in_ch, in_ch * 2, 3, 2, 1),
                     make_basic_conv3d(pg, in_ch * 2, in_ch * 2, 3, 1, 1))
    conv2 = make_seq(make_basic_conv3d(pg, in_ch * 2, in_ch * 4, 3, 2, 1),
                     make_basic_conv3d(pg, in_ch * 4, in_ch * 4, 3, 1, 1))
    conv3 = make_seq(make_basic_conv3d(pg, in_ch * 4, in_ch * 6, 3, 2, 1),
                     make_basic_conv3d(pg, in_ch * 6, in_ch * 6, 3, 1, 1))
    conv3_up = make_basic_conv3d(pg, in_ch * 6, in_ch * 4, 4, 2, 1, deconv=True)
    conv2_up = make_basic_conv3d(pg, in_ch * 4, in_ch * 2, 4, 2, 1, deconv=True)
    conv1_up = make_basic_conv3d(pg, in_ch * 2, 1, 4, 2, 1,
                                 bn=False, relu_act=False, deconv=True)
    agg_0 = make_seq(make_basic_conv3d(pg, in_ch * 8, in_ch * 4, 1, 1, 0),
                     make_basic_conv3d(pg, in_ch * 4, in_ch * 4, 3, 1, 1),
                     make_basic_conv3d(pg, in_ch * 4, in_ch * 4, 3, 1, 1))
    agg_1 = make_seq(make_basic_conv3d(pg, in_ch * 4, in_ch * 2, 1, 1, 0),
                     make_basic_conv3d(pg, in_ch * 2, in_ch * 2, 3, 1, 1),
                     make_basic_conv3d(pg, in_ch * 2, in_ch * 2, 3, 1, 1))
    maf_32 = make_maf(pg, in_ch * 6, 160)
    maf_16 = make_maf(pg, in_ch * 4, 192)
    maf_8 = make_maf(pg, in_ch * 2, 64)

    def apply(x, imgs):
        c1 = conv1(x)
        c2 = conv2(c1)
        c3 = conv3(c2)
        c3 = maf_32(c3, imgs[3])
        c3u = conv3_up(c3)
        c2 = agg_0(jnp.concatenate([c3u, c2], axis=1))
        c2 = maf_16(c2, imgs[2])
        c2u = conv2_up(c2)
        c1 = agg_1(jnp.concatenate([c2u, c1], axis=1))
        c1 = maf_8(c1, imgs[1])
        return conv1_up(c1)
    return apply


def context_upsample(disp_low, up_weights):
    # disp_low: (B,1,h,w), up_weights: (B,9,4h,4w)  (IGEV/CoEx reference impl)
    b, c, h, w = disp_low.shape
    dp = jnp.pad(disp_low, ((0, 0), (0, 0), (1, 1), (1, 1)))
    patches = []
    for i in range(3):
        for j in range(3):
            patches.append(dp[:, 0, i:i + h, j:j + w])
    disp_unfold = jnp.stack(patches, axis=1)                       # (B,9,h,w)
    disp_unfold = jnp.repeat(jnp.repeat(disp_unfold, 4, axis=2), 4, axis=3)
    return jnp.sum(disp_unfold * up_weights, axis=1)               # (B,4h,4w)


def make_maf_stereo(pg, maxdisp):
    feature = make_feature(pg)
    feature_up = make_featup(pg)
    stem_2 = make_seq(make_basic_conv2d(pg, 3, 32, 3, 2, 1),
                      make_conv2d_layer(pg, 32, 32, 3, 1, 1, bias=False,
                                        scale=_BN_SCALE, act="relu"))
    stem_4 = make_seq(make_basic_conv2d(pg, 32, 48, 3, 2, 1),
                      make_conv2d_layer(pg, 48, 48, 3, 1, 1, bias=False,
                                        scale=_BN_SCALE, act="relu"))
    w_spx = pg.deconv2d_w(64, 9, 4)
    b_spx = pg.bias(9)
    spx_2 = make_conv2x(pg, 32, 32, deconv=True)
    spx_4 = make_seq(make_basic_conv2d(pg, 96, 32, 3, 1, 1),
                     make_conv2d_layer(pg, 32, 32, 3, 1, 1, bias=False,
                                       scale=_BN_SCALE, act="relu"))
    conv_ = make_basic_conv2d(pg, 96, 48, 3, 1, 1)
    desc = make_conv2d_layer(pg, 48, 48, 1, 1, 0, bias=True)
    agg = make_feature_att(pg, 8, 96)
    hourglass = make_hourglass_fusion(pg, 8)
    corr_stem = make_basic_conv3d(pg, 4, 8, 3, 1, 1)

    def apply(left, right):
        B = left.shape[0]
        # Shared-weight paths run on the batch-concatenated left/right pair
        # (doubles matmul rows -> better MXU / megacore occupancy).
        lr = jnp.concatenate([left, right], axis=0)
        f = feature(lr)
        f = feature_up(f)
        stem_2lr = stem_2(lr)
        stem_4lr = stem_4(stem_2lr)
        f0 = jnp.concatenate([f[0], stem_4lr], axis=1)        # (2B, 96, H/4, W/4)

        match = desc(conv_(f0))
        match_left, match_right = match[:B], match[B:]

        fl = [f0[:B], f[1][:B], f[2][:B], f[3][:B]]
        stem_2x = stem_2lr[:B]

        corr_volume = pallas_corr_volume(match_left, match_right,
                                         maxdisp=maxdisp // 4, num_groups=4)
        corr_volume = corr_stem(corr_volume)
        volume = agg(corr_volume, fl[0])
        cost = hourglass(volume, fl)[:, 0]          # squeeze(1) -> (B,D,H/4,W/4)

        xspx = spx_4(fl[0])
        xspx = spx_2(xspx, stem_2x)
        spx_pred = deconv2d(xspx, w_spx, 2, 1, bias=b_spx)
        spx_pred = jax.nn.softmax(spx_pred, axis=1)

        cost_t = jnp.moveaxis(cost, 1, -1)                      # (B,H,W,D)
        vals, idx = jax.lax.top_k(cost_t, 2)                    # top-2 disparities
        prob = jax.nn.softmax(vals, axis=-1)
        pred = jnp.sum(prob * idx.astype(jnp.float32), axis=-1)  # (B,H,W)
        pred = pred[:, None]                                     # (B,1,H,W)
        pred_up = context_upsample(pred, spx_pred)
        return [pred_up * 4.0]                      # eval-mode branch
    return apply


# ----------------------------------------------------------------------------
# main
# ----------------------------------------------------------------------------

if __name__ == "__main__":
    key = jax.random.PRNGKey(0)
    k_left, k_right = jax.random.split(key)
    B, H, W = 1, 64, 64                    # smallest config compatible with /32
    maxdisp = 32
    left = jax.random.normal(k_left, (B, 3, H, W), jnp.float32)
    right = jax.random.normal(k_right, (B, 3, H, W), jnp.float32)

    pg = ParamGen(seed=1)
    model = make_maf_stereo(pg, maxdisp=maxdisp)

    outs = model(left, right)
    pred_up = jax.block_until_ready(outs[0])
    assert pred_up.shape == (B, H, W), pred_up.shape
    assert bool(jnp.all(jnp.isfinite(pred_up)))
    print("KERNEL_OK")
</pallas_src>

<mosaic_0001>
module attributes {stable_mosaic.version = 11 : i64} {
  func.func @_matmul_kernel(%arg0: i32, %arg1: memref<256x27xbf16, #tpu.memory_space<vmem>>, %arg2: memref<27x32xbf16, #tpu.memory_space<vmem>>, %arg3: memref<256x32xf32, #tpu.memory_space<vmem>>) attributes {dimension_semantics = [#tpu.dimension_semantics<parallel>], iteration_bounds = array<i64: 8>, scalar_prefetch = 0 : i64, scratch_operands = 0 : i64, tpu.core_type = #tpu.core_type<tc>, window_params = [{transform_indices = @transform_0, window_bounds = array<i64: 256, 27>}, {pipeline_mode = #tpu.pipeline_mode<synchronous>, transform_indices = @transform_1, window_bounds = array<i64: 27, 32>}, {transform_indices = @transform_2, window_bounds = array<i64: 256, 32>}]} {
    %c0 = arith.constant 0 : index
    %c0_0 = arith.constant 0 : index
    %0 = vector.load %arg1[%c0, %c0_0] : memref<256x27xbf16, #tpu.memory_space<vmem>>, vector<256x27xbf16>
    %c0_1 = arith.constant 0 : index
    %c0_2 = arith.constant 0 : index
    %1 = vector.load %arg2[%c0_1, %c0_2] : memref<27x32xbf16, #tpu.memory_space<vmem>>, vector<27x32xbf16>
    %cst = arith.constant dense<0.000000e+00> : vector<256x32xf32>
    %2 = tpu.matmul %0, %1, %cst {dimension_numbers = #tpu.dot_dimension_numbers<[1], [0], [0], [1], [0, 0, 1, 1], [], []>} : vector<256x27xbf16>, vector<27x32xbf16>, vector<256x32xf32> -> vector<256x32xf32>
    %cst_3 = arith.constant 0.999994993 : f32
    %3 = vector.broadcast %cst_3 : f32 to vector<256x32xf32>
    %4 = arith.mulf %2, %3 : vector<256x32xf32>
    %cst_4 = arith.constant 0.000000e+00 : f32
    %cst_5 = arith.constant 6.000000e+00 : f32
    %5 = vector.broadcast %cst_4 : f32 to vector<256x32xf32>
    %6 = arith.maximumf %5, %4 : vector<256x32xf32>
    %7 = vector.broadcast %cst_5 : f32 to vector<256x32xf32>
    %8 = arith.minimumf %7, %6 : vector<256x32xf32>
    %c0_6 = arith.constant 0 : index
    %c0_7 = arith.constant 0 : index
    %9 = vector.load %arg3[%c0_6, %c0_7] : memref<256x32xf32, #tpu.memory_space<vmem>>, vector<256x32xf32>
    tpu.vector_store %arg3[%c0_6, %c0_7], %8 {strides = array<i32>} : memref<256x32xf32, #tpu.memory_space<vmem>>, vector<256x32xf32>,
    return
  }
  func.func @transform_0(%arg0: i32) -> (i32, i32) {
    %c0_i32 = arith.constant 0 : i32
    %c0_i32_0 = arith.constant 0 : i32
    return %arg0, %c0_i32 : i32, i32
  }
  func.func @transform_1(%arg0: i32) -> (i32, i32) {
    %c0_i32 = arith.constant 0 : i32
    %c0_i32_0 = arith.constant 0 : i32
    %c0_i32_1 = arith.constant 0 : i32
    return %c0_i32, %c0_i32_0 : i32, i32
  }
  func.func @transform_2(%arg0: i32) -> (i32, i32) {
    %c0_i32 = arith.constant 0 : i32
    %c0_i32_0 = arith.constant 0 : i32
    return %arg0, %c0_i32 : i32, i32
  }
}

</mosaic_0001>

<bundles_post_ra>
// kernel: pallas_matmul.1
= control target key start
LH: loop header
LB: loop body
LE: loop exit
PB: predicated region body
PF: predicated region fallthrough
CT: control target
= control target key end

     0   :  { %s831_s9 = smov 0   ;;  %s958_s0 = inlined_call_operand.vmem [shape: bf16[2048,27], index: 0, kind: input, shape index: {}]   ;;  %s959_s1 = inlined_call_operand.vmem [shape: bf16[27,32], index: 1, kind: input, shape index: {}]   ;;  %s960_s2 = inlined_call_operand.vmem [shape: f32[2048,32], index: 2, kind: output, shape index: {}]  }
   0x1 LB: > { %s677_s10 = sadd.s32 4294967295, %s813_s9   ;;  %p681_p0 = scmp.ge.s32.totalorder %s813_s9, 1  ;;  %s813_s9 = sphi %s831_s9, %s12_s9  }
   0x2   : > { %p113_p1 = scmp.lt.s32.totalorder %s813_s9, 9 }
   0x4   : > { %p114_p2 = pnand %p681_p0, %p113_p1 }
   0x5   : > { %s682_s13 = sshll.u32 (!%p114_p2), %s677_s10, 5 }
   0x6   : > { %117 = sbr.rel (%p114_p2) target bundleno = 254 (0xfe), region = 28  ;;  %p136_p3 = scmp.lt.s32.totalorder (!%p114_p2), %s682_s13, 255 }
   0xb   : > { %v789_v0 = vld [vmem:[%s959_s1 + $0x8] sm:$0x3f]   ;;  %vm324_vm0 = vcmask 1044480   ;;  %vm325_vm1 = vcmask 1045504   ;;  %v815_v1 = vmov 65535   ;;  %v790_v5 = vld [vmem:[%s959_s1] sm:$0xff]  }
   0xc   : > { %v326_v2 = vsel %vm324_vm0, 4294967295, %v815_v1  ;;  %s962_s13 = smov (!%p136_p3, %s682_s13), 255  ;;  %vm275_vm2 = vcmask 220160   ;;  %vm588_vm3 = vcmask 261120  }
   0xd   : > { %v327_v3 = vsel %vm325_vm1, %v326_v2, 0  ;;  %s683_s16 = sshll.u32 %s962_s13, 2  ;;  %s685_s20 = sshll.u32 %s962_s13, 3 }
   0xe   : > { %v329_v4 = vand.u32 %v789_v0, %v327_v3  ;;  %s851_s19 = scalar_lea.vmem %s958_s0, %s683_s16  ;;  %s889_s23 = scalar_lea.vmem %s960_s2, %s685_s20 }
   0xf   : > { %v791_v6 = vld [vmem:[%s851_s19] sm:$0xff]   ;;  %v793_v8 = vld [vmem:[%s851_s19 + $0x8] sm:$0xff]   ;;  %v795_v10 = vld [vmem:[%s851_s19 + $0x10] sm:$0xff]  }
  0x10   : > { %740 = vmatprep.subr.bf16.mxu0 %v329_v4  ;;  %776 = vmatprep.subr.bf16.mxu1 %v329_v4  ;;  %v792_v7 = vld [vmem:[%s851_s19 + $0x40] sm:$0xff]   ;;  %v794_v9 = vld [vmem:[%s851_s19 + $0x48] sm:$0xff]   ;;  %v796_v11 = vld [vmem:[%s851_s19 + $0x50] sm:$0xff]  }
  0x11   : > { %741 = vmatpush3.bf16.msra.mxu0 %v329_v4  ;;  %778 = vmatpush3.bf16.msra.mxu1 %v329_v4  ;;  %v797_v12 = vld [vmem:[%s851_s19 + $0x18] sm:$0xff]   ;;  %v799_v14 = vld [vmem:[%s851_s19 + $0x20] sm:$0xff]   ;;  %v801_v16 = vld [vmem:[%s851_s19 + $0x28] sm:$0xff]  }
  0x12   : > { %742 = vmatprep.subr.bf16.mxu0 %v790_v5  ;;  %777 = vmatprep.subr.bf16.mxu1 %v790_v5  ;;  %v798_v13 = vld [vmem:[%s851_s19 + $0x58] sm:$0xff]   ;;  %v800_v15 = vld [vmem:[%s851_s19 + $0x60] sm:$0xff]   ;;  %v802_v17 = vld [vmem:[%s851_s19 + $0x68] sm:$0xff]  }
  0x13   : > { %744 = vmatprep.mubr.msk.bf16.mxu0 %vm275_vm2, %v791_v6  ;;  %760 = vmatprep.mubr.msk.bf16.mxu1 %vm275_vm2, %v792_v7  ;;  %v803_v18 = vld [vmem:[%s851_s19 + $0x30] sm:$0xff]   ;;  %v805_v20 = vld [vmem:[%s851_s19 + $0x38] sm:$0xff]  }
  0x14   : > { %v804_v19 = vld [vmem:[%s851_s19 + $0x70] sm:$0xff]   ;;  %v806_v21 = vld [vmem:[%s851_s19 + $0x78] sm:$0xff]  }
  0x15   : > { %743 = vmatpush3.bf16.msra.mxu0 %v790_v5  ;;  %779 = vmatpush3.bf16.msra.mxu1 %v790_v5 }
  0x18   : > { %745 = vmatmul.mubr.msk.bf16.vlgmr.msra.gmra.mxu0 %vm275_vm2, %v793_v8  ;;  %761 = vmatmul.mubr.msk.bf16.vlgmr.msra.gmra.mxu1 %vm275_vm2, %v794_v9 }
  0x19   : > { %748 = vmatprep.mubr.msk.bf16.mxu0 %vm275_vm2, %v795_v10  ;;  %764 = vmatprep.mubr.msk.bf16.mxu1 %vm275_vm2, %v796_v11 }
  0x20   : > { %749 = vmatmul.mubr.msk.bf16.gmra.mxu0 %vm275_vm2, %v797_v12  ;;  %765 = vmatmul.mubr.msk.bf16.gmra.mxu1 %vm275_vm2, %v798_v13 }
  0x21   : > { %752 = vmatprep.mubr.msk.bf16.mxu0 %vm275_vm2, %v799_v14  ;;  %768 = vmatprep.mubr.msk.bf16.mxu1 %vm275_vm2, %v800_v15 }
  0x28   : > { %753 = vmatmul.mubr.msk.bf16.gmra.mxu0 %vm275_vm2, %v801_v16  ;;  %769 = vmatmul.mubr.msk.bf16.gmra.mxu1 %vm275_vm2, %v802_v17 }
  0x29   : > { %756 = vmatprep.mubr.msk.bf16.mxu0 %vm275_vm2, %v803_v18  ;;  %772 = vmatprep.mubr.msk.bf16.mxu1 %vm275_vm2, %v804_v19 }
  0x30   : > { %757 = vmatmul.mubr.msk.bf16.gmra.mxu0 %vm275_vm2, %v805_v20  ;;  %773 = vmatmul.mubr.msk.bf16.gmra.mxu1 %vm275_vm2, %v806_v21 }
  0xd8   : > { %v746_v22 = vpop.f32.mrf.mxu0  ;;  %v762_v23 = vpop.f32.mrf.mxu1 }
  0xd9   : > { %v494_v24 = vmul.f32 0.999995, %v746_v22  ;;  %v510_v25 = vmul.f32 0.999995, %v762_v23 }
  0xda   : > { %v365_v26 = vpop.f32.mrf.mxu0  ;;  %v429_v27 = vpop.f32.mrf.mxu1 }
  0xdb   : > { %v526_v28 = vmax.f32 %v494_v24, 0.0  ;;  %v542_v29 = vmax.f32 %v510_v25, 0.0  ;;  %v492_v30 = vmul.f32 0.999995, %v365_v26  ;;  %v508_v31 = vmul.f32 0.999995, %v429_v27 }
  0xdc   : > { %v747_v32 = vpop.f32.mrf.mxu0  ;;  %v763_v33 = vpop.f32.mrf.mxu1 }
  0xdd   : > { %v558_v34 = vmin.f32 %v526_v28, 6.0  ;;  %v574_v35 = vmin.f32 %v542_v29, 6.0  ;;  %v524_v36 = vmax.f32 %v492_v30, 0.0  ;;  %v540_v37 = vmax.f32 %v508_v31, 0.0 }
  0xde   : > { %v495_v38 = vmul.f32 0.999995, %v747_v32  ;;  %v511_v39 = vmul.f32 0.999995, %v763_v33  ;;  %v368_v40 = vpop.f32.mrf.mxu0  ;;  %v432_v41 = vpop.f32.mrf.mxu1 }
  0xdf   : > { %591 = vst.msk [vmem:[%s889_s23 + $0x10] sm:$0xff] %vm588_vm3, %v558_v34  ;;  %607 = vst.msk [vmem:[%s889_s23 + $0x90] sm:$0xff] %vm588_vm3, %v574_v35  ;;  %v556_v42 = vmin.f32 %v524_v36, 6.0  ;;  %v572_v43 = vmin.f32 %v540_v37, 6.0  ;;  %v493_v44 = vmul.f32 0.999995, %v368_v40 }
  0xe0   : > { %v509_v45 = vmul.f32 0.999995, %v432_v41  ;;  %v527_v46 = vmax.f32 %v495_v38, 0.0  ;;  %v543_v47 = vmax.f32 %v511_v39, 0.0  ;;  %v750_v48 = vpop.f32.mrf.mxu0  ;;  %v766_v49 = vpop.f32.mrf.mxu1 }
  0xe1   : > { %589 = vst.msk [vmem:[%s889_s23] sm:$0xff] %vm588_vm3, %v556_v42  ;;  %605 = vst.msk [vmem:[%s889_s23 + $0x80] sm:$0xff] %vm588_vm3, %v572_v43  ;;  %v525_v50 = vmax.f32 %v493_v44, 0.0  ;;  %v498_v52 = vmul.f32 0.999995, %v750_v48 }
  0xe2   : > { %v541_v51 = vmax.f32 %v509_v45, 0.0  ;;  %v514_v53 = vmul.f32 0.999995, %v766_v49  ;;  %v559_v54 = vmin.f32 %v527_v46, 6.0  ;;  %v575_v55 = vmin.f32 %v543_v47, 6.0  ;;  %v381_v56 = vpop.f32.mrf.mxu0  ;;  %v445_v57 = vpop.f32.mrf.mxu1 }
  0xe3   : > { %v557_v58 = vmin.f32 %v525_v50, 6.0  ;;  %v530_v60 = vmax.f32 %v498_v52, 0.0  ;;  %v496_v62 = vmul.f32 0.999995, %v381_v56  ;;  %v512_v63 = vmul.f32 0.999995, %v445_v57 }
  0xe4   : > { %v573_v59 = vmin.f32 %v541_v51, 6.0  ;;  %v546_v61 = vmax.f32 %v514_v53, 0.0  ;;  %592 = vst.msk [vmem:[%s889_s23 + $0x18] sm:$0xff] %vm588_vm3, %v559_v54  ;;  %608 = vst.msk [vmem:[%s889_s23 + $0x98] sm:$0xff] %vm588_vm3, %v575_v55  ;;  %v751_v0 = vpop.f32.mrf.mxu0  ;;  %v767_v1 = vpop.f32.mrf.mxu1 }
  0xe5   : > { %590 = vst.msk [vmem:[%s889_s23 + $0x8] sm:$0xff] %vm588_vm3, %v557_v58  ;;  %v562_v2 = vmin.f32 %v530_v60, 6.0  ;;  %v499_v4 = vmul.f32 0.999995, %v751_v0  ;;  %v515_v5 = vmul.f32 0.999995, %v767_v1 }
  0xe6   : > { %606 = vst.msk [vmem:[%s889_s23 + $0x88] sm:$0xff] %vm588_vm3, %v573_v59  ;;  %v578_v3 = vmin.f32 %v546_v61, 6.0  ;;  %v528_v6 = vmax.f32 %v496_v62, 0.0  ;;  %v544_v7 = vmax.f32 %v512_v63, 0.0  ;;  %v384_v8 = vpop.f32.mrf.mxu0  ;;  %v448_v9 = vpop.f32.mrf.mxu1 }
  0xe7   : > { %595 = vst.msk [vmem:[%s889_s23 + $0x30] sm:$0xff] %vm588_vm3, %v562_v2  ;;  %v531_v10 = vmax.f32 %v499_v4, 0.0  ;;  %v547_v11 = vmax.f32 %v515_v5, 0.0  ;;  %v497_v12 = vmul.f32 0.999995, %v384_v8 }
  0xe8   : > { %611 = vst.msk [vmem:[%s889_s23 + $0xb0] sm:$0xff] %vm588_vm3, %v578_v3  ;;  %v513_v13 = vmul.f32 0.999995, %v448_v9  ;;  %v560_v14 = vmin.f32 %v528_v6, 6.0  ;;  %v576_v15 = vmin.f32 %v544_v7, 6.0  ;;  %v754_v16 = vpop.f32.mrf.mxu0  ;;  %v770_v17 = vpop.f32.mrf.mxu1 }
  0xe9   : > { %v563_v18 = vmin.f32 %v531_v10, 6.0  ;;  %v579_v19 = vmin.f32 %v547_v11, 6.0  ;;  %v529_v20 = vmax.f32 %v497_v12, 0.0  ;;  %v502_v22 = vmul.f32 0.999995, %v754_v16 }
  0xea   : > { %v545_v21 = vmax.f32 %v513_v13, 0.0  ;;  %593 = vst.msk [vmem:[%s889_s23 + $0x20] sm:$0xff] %vm588_vm3, %v560_v14  ;;  %609 = vst.msk [vmem:[%s889_s23 + $0xa0] sm:$0xff] %vm588_vm3, %v576_v15  ;;  %v518_v23 = vmul.f32 0.999995, %v770_v17  ;;  %v397_v24 = vpop.f32.mrf.mxu0  ;;  %v461_v25 = vpop.f32.mrf.mxu1 }
  0xeb   : > { %596 = vst.msk [vmem:[%s889_s23 + $0x38] sm:$0xff] %vm588_vm3, %v563_v18  ;;  %612 = vst.msk [vmem:[%s889_s23 + $0xb8] sm:$0xff] %vm588_vm3, %v579_v19  ;;  %v561_v26 = vmin.f32 %v529_v20, 6.0  ;;  %v500_v28 = vmul.f32 0.999995, %v397_v24  ;;  %v534_v30 = vmax.f32 %v502_v22, 0.0 }
  0xec   : > { %v577_v27 = vmin.f32 %v545_v21, 6.0  ;;  %v516_v29 = vmul.f32 0.999995, %v461_v25  ;;  %v550_v31 = vmax.f32 %v518_v23, 0.0  ;;  %v755_v32 = vpop.f32.mrf.mxu0  ;;  %v771_v33 = vpop.f32.mrf.mxu1 }
  0xed   : > { %594 = vst.msk [vmem:[%s889_s23 + $0x28] sm:$0xff] %vm588_vm3, %v561_v26  ;;  %v532_v34 = vmax.f32 %v500_v28, 0.0  ;;  %v503_v36 = vmul.f32 0.999995, %v755_v32  ;;  %v519_v37 = vmul.f32 0.999995, %v771_v33 }
  0xee   : > { %610 = vst.msk [vmem:[%s889_s23 + $0xa8] sm:$0xff] %vm588_vm3, %v577_v27  ;;  %v548_v35 = vmax.f32 %v516_v29, 0.0  ;;  %v566_v38 = vmin.f32 %v534_v30, 6.0  ;;  %v582_v39 = vmin.f32 %v550_v31, 6.0  ;;  %v400_v40 = vpop.f32.mrf.mxu0  ;;  %v464_v41 = vpop.f32.mrf.mxu1 }
  0xef   : > { %v564_v42 = vmin.f32 %v532_v34, 6.0  ;;  %v535_v44 = vmax.f32 %v503_v36, 0.0  ;;  %v551_v45 = vmax.f32 %v519_v37, 0.0  ;;  %v501_v46 = vmul.f32 0.999995, %v400_v40 }
  0xf0   : > { %v580_v43 = vmin.f32 %v548_v35, 6.0  ;;  %599 = vst.msk [vmem:[%s889_s23 + $0x50] sm:$0xff] %vm588_vm3, %v566_v38  ;;  %615 = vst.msk [vmem:[%s889_s23 + $0xd0] sm:$0xff] %vm588_vm3, %v582_v39  ;;  %v517_v47 = vmul.f32 0.999995, %v464_v41  ;;  %v758_v48 = vpop.f32.mrf.mxu0  ;;  %v774_v49 = vpop.f32.mrf.mxu1 }
  0xf1   : > { %597 = vst.msk [vmem:[%s889_s23 + $0x40] sm:$0xff] %vm588_vm3, %v564_v42  ;;  %v567_v50 = vmin.f32 %v535_v44, 6.0  ;;  %v583_v51 = vmin.f32 %v551_v45, 6.0  ;;  %v506_v52 = vmul.f32 0.999995, %v758_v48  ;;  %v533_v54 = vmax.f32 %v501_v46, 0.0 }
  0xf2   : > { %613 = vst.msk [vmem:[%s889_s23 + $0xc0] sm:$0xff] %vm588_vm3, %v580_v43  ;;  %v522_v53 = vmul.f32 0.999995, %v774_v49  ;;  %v549_v55 = vmax.f32 %v517_v47, 0.0  ;;  %v413_v56 = vpop.f32.mrf.mxu0  ;;  %v477_v57 = vpop.f32.mrf.mxu1 }
  0xf3   : > { %600 = vst.msk [vmem:[%s889_s23 + $0x58] sm:$0xff] %vm588_vm3, %v567_v50  ;;  %616 = vst.msk [vmem:[%s889_s23 + $0xd8] sm:$0xff] %vm588_vm3, %v583_v51  ;;  %v538_v58 = vmax.f32 %v506_v52, 0.0  ;;  %v504_v60 = vmul.f32 0.999995, %v413_v56  ;;  %v565_v62 = vmin.f32 %v533_v54, 6.0 }
  0xf4   : > { %v554_v59 = vmax.f32 %v522_v53, 0.0  ;;  %v520_v61 = vmul.f32 0.999995, %v477_v57  ;;  %v581_v63 = vmin.f32 %v549_v55, 6.0  ;;  %v759_v0 = vpop.f32.mrf.mxu0  ;;  %v775_v1 = vpop.f32.mrf.mxu1 }
  0xf5   : > { %v570_v2 = vmin.f32 %v538_v58, 6.0  ;;  %v536_v4 = vmax.f32 %v504_v60, 0.0  ;;  %598 = vst.msk [vmem:[%s889_s23 + $0x48] sm:$0xff] %vm588_vm3, %v565_v62  ;;  %v507_v6 = vmul.f32 0.999995, %v759_v0 }
  0xf6   : > { %v586_v3 = vmin.f32 %v554_v59, 6.0  ;;  %v552_v5 = vmax.f32 %v520_v61, 0.0  ;;  %614 = vst.msk [vmem:[%s889_s23 + $0xc8] sm:$0xff] %vm588_vm3, %v581_v63  ;;  %v523_v7 = vmul.f32 0.999995, %v775_v1  ;;  %v416_v8 = vpop.f32.mrf.mxu0  ;;  %v480_v9 = vpop.f32.mrf.mxu1 }
  0xf7   : > { %603 = vst.msk [vmem:[%s889_s23 + $0x70] sm:$0xff] %vm588_vm3, %v570_v2  ;;  %v568_v10 = vmin.f32 %v536_v4, 6.0  ;;  %v505_v12 = vmul.f32 0.999995, %v416_v8  ;;  %v521_v13 = vmul.f32 0.999995, %v480_v9 }
  0xf8   : > { %619 = vst.msk [vmem:[%s889_s23 + $0xf0] sm:$0xff] %vm588_vm3, %v586_v3  ;;  %v584_v11 = vmin.f32 %v552_v5, 6.0  ;;  %v539_v14 = vmax.f32 %v507_v6, 0.0  ;;  %v555_v15 = vmax.f32 %v523_v7, 0.0 }
  0xf9   : > { %601 = vst.msk [vmem:[%s889_s23 + $0x60] sm:$0xff] %vm588_vm3, %v568_v10  ;;  %v537_v16 = vmax.f32 %v505_v12, 0.0  ;;  %v553_v17 = vmax.f32 %v521_v13, 0.0 }
  0xfa   : > { %617 = vst.msk [vmem:[%s889_s23 + $0xe0] sm:$0xff] %vm588_vm3, %v584_v11  ;;  %v571_v18 = vmin.f32 %v539_v14, 6.0  ;;  %v587_v19 = vmin.f32 %v555_v15, 6.0 }
  0xfb   : > { %v569_v20 = vmin.f32 %v537_v16, 6.0  ;;  %v585_v21 = vmin.f32 %v553_v17, 6.0 }
  0xfc   : > { %604 = vst.msk [vmem:[%s889_s23 + $0x78] sm:$0xff] %vm588_vm3, %v571_v18  ;;  %620 = vst.msk [vmem:[%s889_s23 + $0xf8] sm:$0xff] %vm588_vm3, %v587_v19 }
  0xfd   : > { %602 = vst.msk [vmem:[%s889_s23 + $0x68] sm:$0xff] %vm588_vm3, %v569_v20  ;;  %618 = vst.msk [vmem:[%s889_s23 + $0xe8] sm:$0xff] %vm588_vm3, %v585_v21 }
  0xfe PF: > { %s12_s9 = sadd.s32 1, %s813_s9  }
  0xff   : > { %p9_p4 = scmp.ge.s32.totalorder %s12_s9, 10  }
 0x101   :  { %11 = sbr.rel (!%p9_p4) target bundleno = 1 (0x1), region = 58 }

</bundles_post_ra>
